<compile_context>
chip_gen: v6e
topology: v6e:2x2x1
jax: 0.10.0
libtpu: 0.0.40
codegen_flags: <defaults>
</compile_context>

<pallas_src>
import math
import jax
import jax.numpy as jnp
from jax import lax
from jax.experimental import pallas as pl
from jax.experimental.pallas import tpu as pltpu


def _round_up(x, m):
    return (x + m - 1) // m * m


def _pick_tile(padded_dim, preferred, step):
    """Largest multiple-of-`step` tile <= preferred that divides padded_dim."""
    t = min(preferred, padded_dim)
    while padded_dim % t:
        t -= step
    return t


# ----------------------------------------------------------------------------
# Kernel 1: backbone linear projection  embedd = x_flat @ W_t
#   x_flat : (Bp, Dp)  compute_dtype
#   w      : (Dp, Ep)  compute_dtype   (pre-transposed + padded ONCE at init)
#   out    : (Bp, Ep)  f32
# Tiled matmul; K-axis accumulation directly into the resident f32 output
# block (no VMEM accumulator scratch, no finalize copy).
# ----------------------------------------------------------------------------
def _backbone_kernel(x_ref, w_ref, o_ref):
    k = pl.program_id(2)
    prod = jnp.dot(x_ref[...], w_ref[...], preferred_element_type=jnp.float32)

    @pl.when(k == 0)
    def _():
        o_ref[...] = prod

    @pl.when(k != 0)
    def _():
        o_ref[...] += prod


def backbone_forward(x_flat, w_padded, *, emb_size, tn, tk,
                     compute_dtype=jnp.float32, tm_pref=128):
    B, D = x_flat.shape
    Dp, Ep = w_padded.shape
    assert D <= Dp and Dp % tk == 0 and Ep % tn == 0

    Bp = _round_up(B, 8)
    tm = _pick_tile(Bp, tm_pref, 8)

    xp = jnp.pad(x_flat, ((0, Bp - B), (0, Dp - D))).astype(compute_dtype)

    grid = (Bp // tm, Ep // tn, Dp // tk)
    itemsize = jnp.dtype(compute_dtype).itemsize
    cost = pl.CostEstimate(
        flops=2 * Bp * Dp * Ep,
        transcendentals=0,
        bytes_accessed=itemsize * (Bp * Dp * (Ep // tn) + Dp * Ep * (Bp // tm))
        + 4 * Bp * Ep,
    )

    out = pl.pallas_call(
        _backbone_kernel,
        out_shape=jax.ShapeDtypeStruct((Bp, Ep), jnp.float32),
        grid_spec=pltpu.PrefetchScalarGridSpec(
            num_scalar_prefetch=0,
            grid=grid,
            in_specs=[
                pl.BlockSpec((tm, tk), lambda i, j, k: (i, k)),
                pl.BlockSpec((tk, tn), lambda i, j, k: (k, j)),
            ],
            out_specs=pl.BlockSpec((tm, tn), lambda i, j, k: (i, j)),
        ),
        compiler_params=pltpu.CompilerParams(
            dimension_semantics=("parallel", "parallel", "arbitrary"),
            vmem_limit_bytes=32 * 1024 * 1024,
        ),
        cost_estimate=cost,
    )(xp, w_padded)
    return out[:B, :emb_size]


# ----------------------------------------------------------------------------
# Kernel 2: Arcface.compute (inherited; not routed through ArcfaceRkd.forward,
# provided for completeness of the class's compute path).
#   lbl_smem : (tb,)    i32  scalar-prefetched labels (padded with -1)
#   fea      : (tb, te) f32
#   w        : (te, Cp) f32  class weight, pre-transposed + padded at init
#   inv_w    : (1, Cp)  f32  1 / max(||w_col||, eps), precomputed at init
#   inv_fea  : (tb, 1)  f32  1 / max(||fea_row||, eps), computed per call
#   lbl_vmem : (tb, 1)  i32  labels for the one-hot compare
#   out      : (tb, Cp) f32
# Tiled over the class dimension; normalization folded into post-matmul
# scaling; margin chain skipped on class tiles containing no label.
# ----------------------------------------------------------------------------
def _make_arcface_kernel(s, m, easy_margin):
    cos_m = math.cos(m)
    sin_m = math.sin(m)
    th = math.cos(math.pi - m)
    mm = math.sin(math.pi - m) * m

    def kernel(lbl_smem, fea_ref, w_ref, invw_ref, invfea_ref, lblv_ref, o_ref):
        j = pl.program_id(0)
        tc = o_ref.shape[-1]
        lo = j * tc

        # cosine = normalize(fea) @ normalize(w)^T
        #        = (fea @ w) * inv||fea|| * inv||w||   (scales commute through
        #          the contraction; clamp is inside the precomputed inv-norms)
        raw = jnp.dot(fea_ref[...], w_ref[...], preferred_element_type=jnp.float32)
        cosine = raw * invfea_ref[...] * invw_ref[...]

        # Does any label fall inside this class tile?  (scalar loop over SMEM)
        def body(i, acc):
            l = lbl_smem[i]
            return acc | ((l >= lo) & (l < lo + tc)).astype(jnp.int32)

        n_hit = lax.fori_loop(0, lbl_smem.shape[0], body, jnp.int32(0))

        @pl.when(n_hit == 0)
        def _():
            # No label in this tile: the one-hot mix is the identity, so skip
            # the whole sqrt / compare / select margin chain.
            o_ref[...] = cosine * s

        @pl.when(n_hit != 0)
        def _():
            sine = jnp.sqrt(jnp.clip(1.0 - cosine * cosine, 0.0, 1.0))
            phi = cosine * cos_m - sine * sin_m
            if easy_margin:
                phi = jnp.where(cosine > 0.0, phi, cosine)
            else:
                phi = jnp.where(cosine > th, phi, cosine - mm)
            col = lo + lax.broadcasted_iota(jnp.int32, cosine.shape, 1)
            one_hot = col == lblv_ref[...]
            o_ref[...] = jnp.where(one_hot, phi, cosine) * s

    return kernel


def arcface_compute(fea, label, w_padded, inv_w, *, num_class, s, m,
                    easy_margin, tc):
    B, E = fea.shape
    te, Cp = w_padded.shape
    assert _round_up(E, 128) == te and Cp % tc == 0

    tb = _round_up(B, 8)
    eps_sq = 1e-24  # (F.normalize eps=1e-12)^2

    fea_p = jnp.pad(fea, ((0, tb - B), (0, te - E))).astype(jnp.float32)
    # per-row inverse norm (tiny (B,1) reduction, once per call — not per tile)
    inv_fea = lax.rsqrt(jnp.maximum(
        jnp.sum(fea_p * fea_p, axis=-1, keepdims=True), eps_sq))

    lbl = label.reshape(-1).astype(jnp.int32)
    lbl_smem = jnp.pad(lbl, (0, tb - B), constant_values=-1)   # (tb,)
    lbl_vmem = lbl_smem.reshape(tb, 1)                          # (tb, 1)

    cost = pl.CostEstimate(
        flops=2 * tb * te * Cp + 10 * tb * Cp,
        transcendentals=tb * Cp,
        bytes_accessed=4 * (tb * te + te * Cp + Cp + tb * Cp) + 8 * tb,
    )

    out = pl.pallas_call(
        _make_arcface_kernel(s, m, easy_margin),
        out_shape=jax.ShapeDtypeStruct((tb, Cp), jnp.float32),
        grid_spec=pltpu.PrefetchScalarGridSpec(
            num_scalar_prefetch=1,
            grid=(Cp // tc,),
            in_specs=[
                pl.BlockSpec((tb, te), lambda j, _lbl: (0, 0)),
                pl.BlockSpec((te, tc), lambda j, _lbl: (0, j)),
                pl.BlockSpec((1, tc), lambda j, _lbl: (0, j)),
                pl.BlockSpec((tb, 1), lambda j, _lbl: (0, 0)),
                pl.BlockSpec((tb, 1), lambda j, _lbl: (0, 0)),
            ],
            out_specs=pl.BlockSpec((tb, tc), lambda j, _lbl: (0, j)),
        ),
        compiler_params=pltpu.CompilerParams(
            dimension_semantics=("parallel",),
            vmem_limit_bytes=32 * 1024 * 1024,
        ),
        cost_estimate=cost,
    )(lbl_smem, fea_p, w_padded, inv_w, inv_fea, lbl_vmem)
    return out[:B, :num_class]


# ----------------------------------------------------------------------------
# ArcfaceRkd module wrapper
# ----------------------------------------------------------------------------
class ArcfaceRkdPallas:
    def __init__(self, emb_size, num_class, margin_s, margin_m,
                 easy_margin=False, *, key, in_features,
                 use_bf16_matmul=False):
        assert margin_s > 0.0
        assert margin_m >= 0.0
        assert margin_m < math.pi / 2
        self.emb_size = emb_size
        self.num_class = num_class
        self.s = float(margin_s)
        self.m = float(margin_m)
        self.easy_margin = easy_margin
        self.matmul_dtype = jnp.bfloat16 if use_bf16_matmul else jnp.float32

        k_w, k_b = jax.random.split(key)
        eps_sq = 1e-24

        # ---- ArcFace classification weight: xavier_uniform on (C, E) ----
        bound = math.sqrt(6.0 / (num_class + emb_size))
        self.weight = jax.random.uniform(
            k_w, (num_class, emb_size), jnp.float32, -bound, bound)

        te = _round_up(emb_size, 128)
        Cp = _round_up(num_class, 128)
        self.arc_tc = _pick_tile(Cp, 2048, 128)
        # pre-transpose + pad ONCE -> (te, Cp): lane-dense logits, contraction
        # on the RHS leading dim (no in-kernel transpose), no per-call pad.
        w_t_pad = jnp.pad(self.weight.T,
                          ((0, te - emb_size), (0, Cp - num_class)))
        self.weight_t_padded = jnp.asarray(w_t_pad)
        # column inverse norms precomputed once (F.normalize(weight) folded
        # into a post-matmul scale inside the kernel).
        self.inv_norm_w = lax.rsqrt(jnp.maximum(
            jnp.sum(w_t_pad * w_t_pad, axis=0, keepdims=True), eps_sq))  # (1,Cp)

        # ---- synthetic deterministic backbone: linear (E, D_in) ----
        # TODO(synk): the real backbone `model` is injected externally; a
        # flatten -> linear projection stands in for it here.
        bbound = math.sqrt(6.0 / (in_features + emb_size))
        self.w_backbone = jax.random.uniform(
            k_b, (emb_size, in_features), jnp.float32, -bbound, bbound)

        Ep = _round_up(emb_size, 128)
        Dp = _round_up(in_features, 128)
        self.bb_tn = _pick_tile(Ep, 512, 128)
        self.bb_tk = _pick_tile(Dp, 2048, 128)
        # pre-transpose + pad (+ optional bf16 cast) ONCE -> (Dp, Ep)
        self.w_backbone_padded = jnp.pad(
            self.w_backbone.T,
            ((0, Dp - in_features), (0, Ep - emb_size))).astype(self.matmul_dtype)

    def forward(self, label, image):
        # image: NCHW; flatten matches torch .view(B, -1) on NCHW (row-major).
        B = image.shape[0]
        x_flat = image.reshape(B, -1).astype(jnp.float32)
        embedd = backbone_forward(
            x_flat, self.w_backbone_padded,
            emb_size=self.emb_size, tn=self.bb_tn, tk=self.bb_tk,
            compute_dtype=self.matmul_dtype)
        if label is None:
            return embedd
        # ArcfaceRkd: return the embedding even when label is provided.
        return embedd

    # inherited Arcface.compute path (exercised separately)
    def compute(self, fea, label):
        return arcface_compute(
            fea, label, self.weight_t_padded, self.inv_norm_w,
            num_class=self.num_class, s=self.s, m=self.m,
            easy_margin=self.easy_margin, tc=self.arc_tc)


if __name__ == "__main__":
    key = jax.random.PRNGKey(0)
    k_img, k_lbl, k_mod = jax.random.split(key, 3)

    B, C, H, W = 2, 4, 16, 16
    emb_size, num_class = 32, 64
    in_features = C * H * W

    module = ArcfaceRkdPallas(emb_size, num_class,
                              margin_s=64.0, margin_m=0.5,
                              easy_margin=False,
                              key=k_mod, in_features=in_features)

    image = jax.random.normal(k_img, (B, C, H, W), jnp.float32)
    label = jax.random.randint(k_lbl, (B,), 0, num_class, jnp.int32)

    # ArcfaceRkd.forward: returns the embedding regardless of label.
    embedd = module.forward(label, image)
    jax.block_until_ready(embedd)
    assert embedd.shape == (B, emb_size)

    # Also exercise the inherited Arcface margin-logits kernel.
    logits = module.compute(embedd, label)
    jax.block_until_ready(logits)
    assert logits.shape == (B, num_class)

    # quick correctness check vs plain-JAX reference
    ref_emb = image.reshape(B, -1) @ module.w_backbone.T
    assert jnp.allclose(embedd, ref_emb, atol=1e-4, rtol=1e-4)

    fea_n = ref_emb / jnp.maximum(
        jnp.linalg.norm(ref_emb, axis=-1, keepdims=True), 1e-12)
    w_n = module.weight / jnp.maximum(
        jnp.linalg.norm(module.weight, axis=-1, keepdims=True), 1e-12)
    cos = fea_n @ w_n.T
    sin = jnp.sqrt(jnp.clip(1 - cos ** 2, 0, 1))
    phi = cos * math.cos(0.5) - sin * math.sin(0.5)
    phi = jnp.where(cos > math.cos(math.pi - 0.5), phi,
                    cos - math.sin(math.pi - 0.5) * 0.5)
    oh = jax.nn.one_hot(label, num_class, dtype=jnp.float32)
    ref_logits = (oh * phi + (1 - oh) * cos) * 64.0
    assert jnp.allclose(logits, ref_logits, atol=5e-3, rtol=1e-3)

    print("KERNEL_OK")
</pallas_src>

<mosaic_0001>
module attributes {stable_mosaic.version = 11 : i64} {
  func.func @_backbone_kernel(%arg0: i32, %arg1: i32, %arg2: i32, %arg3: memref<8x1024xf32, #tpu.memory_space<vmem>>, %arg4: memref<1024x128xf32, #tpu.memory_space<vmem>>, %arg5: memref<8x128xf32, #tpu.memory_space<vmem>>) attributes {dimension_semantics = [#tpu.dimension_semantics<parallel>, #tpu.dimension_semantics<parallel>, #tpu.dimension_semantics<arbitrary>], iteration_bounds = array<i64: 1, 1, 1>, scalar_prefetch = 0 : i64, scratch_operands = 0 : i64, tpu.core_type = #tpu.core_type<tc>, window_params = [{transform_indices = @transform_0, window_bounds = array<i64: 8, 1024>}, {transform_indices = @transform_1, window_bounds = array<i64: 1024, 128>}, {transform_indices = @transform_2, window_bounds = array<i64: 8, 128>}]} {
    %c0 = arith.constant 0 : index
    %c0_0 = arith.constant 0 : index
    %0 = vector.load %arg3[%c0, %c0_0] : memref<8x1024xf32, #tpu.memory_space<vmem>>, vector<8x1024xf32>
    %c0_1 = arith.constant 0 : index
    %c0_2 = arith.constant 0 : index
    %1 = vector.load %arg4[%c0_1, %c0_2] : memref<1024x128xf32, #tpu.memory_space<vmem>>, vector<1024x128xf32>
    %cst = arith.constant dense<0.000000e+00> : vector<8x128xf32>
    %2 = tpu.matmul %0, %1, %cst {dimension_numbers = #tpu.dot_dimension_numbers<[1], [0], [0], [1], [0, 0, 1, 1], [], []>} : vector<8x1024xf32>, vector<1024x128xf32>, vector<8x128xf32> -> vector<8x128xf32>
    %c0_i32 = arith.constant 0 : i32
    %3 = arith.cmpi eq, %arg2, %c0_i32 : i32
    %4 = arith.extui %3 : i1 to i32
    %c0_i32_3 = arith.constant 0 : i32
    %5 = arith.cmpi ne, %4, %c0_i32_3 : i32
    scf.if %5 {
      %c0_6 = arith.constant 0 : index
      %c0_7 = arith.constant 0 : index
      %9 = vector.load %arg5[%c0_6, %c0_7] : memref<8x128xf32, #tpu.memory_space<vmem>>, vector<8x128xf32>
      tpu.vector_store %arg5[%c0_6, %c0_7], %2 {strides = array<i32>} : memref<8x128xf32, #tpu.memory_space<vmem>>, vector<8x128xf32>,
    } else {
    }
    %c0_i32_4 = arith.constant 0 : i32
    %6 = arith.cmpi ne, %arg2, %c0_i32_4 : i32
    %7 = arith.extui %6 : i1 to i32
    %c0_i32_5 = arith.constant 0 : i32
    %8 = arith.cmpi ne, %7, %c0_i32_5 : i32
    scf.if %8 {
      %c0_6 = arith.constant 0 : index
      %c0_7 = arith.constant 0 : index
      %9 = vector.load %arg5[%c0_6, %c0_7] : memref<8x128xf32, #tpu.memory_space<vmem>>, vector<8x128xf32>
      %10 = arith.addf %9, %2 : vector<8x128xf32>
      %c0_8 = arith.constant 0 : index
      %c0_9 = arith.constant 0 : index
      %11 = vector.load %arg5[%c0_8, %c0_9] : memref<8x128xf32, #tpu.memory_space<vmem>>, vector<8x128xf32>
      tpu.vector_store %arg5[%c0_8, %c0_9], %10 {strides = array<i32>} : memref<8x128xf32, #tpu.memory_space<vmem>>, vector<8x128xf32>,
    } else {
    }
    return
  }
  func.func @transform_0(%arg0: i32, %arg1: i32, %arg2: i32) -> (i32, i32) {
    %c0_i32 = arith.constant 0 : i32
    return %arg0, %arg2 : i32, i32
  }
  func.func @transform_1(%arg0: i32, %arg1: i32, %arg2: i32) -> (i32, i32) {
    %c0_i32 = arith.constant 0 : i32
    return %arg2, %arg1 : i32, i32
  }
  func.func @transform_2(%arg0: i32, %arg1: i32, %arg2: i32) -> (i32, i32) {
    %c0_i32 = arith.constant 0 : i32
    return %arg0, %arg1 : i32, i32
  }
}

</mosaic_0001>

<bundles_post_ra>
// kernel: tpu_custom_call.1
= control target key start
LH: loop header
LB: loop body
LE: loop exit
PB: predicated region body
PF: predicated region fallthrough
CT: control target
= control target key end

     0   :  { %7 = vsyncpa [#allocation3], 0  ;;  %s722_s0 = inlined_call_operand.hbm [shape: f32[8,1024], index: 0, kind: input, shape index: {}]   ;;  %s723_s1 = inlined_call_operand.hbm [shape: f32[1024,128], index: 1, kind: input, shape index: {}]   ;;  %s724_s2 = inlined_call_operand.hbm [shape: f32[8,128], index: 2, kind: output, shape index: {}]  }
   0x1   :  { %8 = vsyncpa [#allocation6], 0 }
   0x2   :  { %9 = vsyncpa [#allocation4], 0  ;;  %s693_s9 = smov [#allocation2]   ;;  %s694_s11 = smov [#allocation5]  }
   0x3   :  { %s16_s10 = sshll.u32 %s693_s9, 4  ;;  %s25_s12 = sshll.u32 %s694_s11, 4  ;;  %s17_s10 = int_to_ptr.vmem [resolvable:$true] %s16_s10  ;;  %s26_s12 = int_to_ptr.vmem [resolvable:$true] %s25_s12 }
   0x4   :  { %s635_s13 = scalar_lea.vmem %s17_s10, 1024  ;;  %p640_p1 = scmp.lt.s32.totalorder %s17_s10, %s17_s10 }
   0x5   :  { %p636_p0 = scmp.ne.s32.totalorder %s17_s10, %s635_s13  ;;  %p641_p2 = scmp.lt.s32.totalorder %s635_s13, %s635_s13 }
   0x7   :  { %p642_p3 = por %p641_p2, %p640_p1 }
   0x9   :  { %p643_p4 = pnand %p642_p3, %p636_p0 }
   0xb   :  { %646 = shalt.err (!%p643_p4)
}
   0xc   :  { %19 = dma.hbm_to_vmem [thread:$0]  %s722_s0, 1024, %s17_s10, [#allocation3]  }
   0xd   :  { %s655_s16 = scalar_lea.vmem %s26_s12, 16384  ;;  %p660_p6 = scmp.lt.s32.totalorder %s26_s12, %s26_s12 }
   0xe   :  { %p656_p5 = scmp.ne.s32.totalorder %s26_s12, %s655_s16  ;;  %p661_p7 = scmp.lt.s32.totalorder %s655_s16, %s655_s16 }
  0x10   :  { %p662_p8 = por %p661_p7, %p660_p6 }
  0x12   :  { %p663_p9 = pnand %p662_p8, %p656_p5 }
  0x14   :  { %666 = shalt.err (!%p663_p9)
}
  0x15   :  { %s695_s17 = smov 128   ;;  %s696_s18 = smov 8  }
  0x16   :  { %31 = dma.hbm_to_vmem [thread:$0]  %s723_s1, 16384, %s26_s12, [#allocation6], %s695_s17, %s695_s17, %s696_s18  }
  0x17   :  { %687 = dma.done.wait [#allocation3], 1024  }
  0x18   :  { %688 = vsyncadd [#allocation3], 4294966272 }
  0x19   :  { %689 = dma.done.wait [#allocation6], 16384  }
  0x1a   :  { %690 = vsyncadd [#allocation6], 4294950912  ;;  %v77_v0 = vld [vmem:[#allocation5 + $0xf8] sm:$0xff]  ;;  %v76_v4 = vld [vmem:[#allocation5 + $0xf0] sm:$0xff]  ;;  %s697_s0 = smov [#allocation7]  }
  0x1b   :  { %v109_v1 = vld [vmem:[#allocation5 + $0x1f8] sm:$0xff]  ;;  %482 = vmatprep.subr.mxu0 %v77_v0  ;;  %v108_v5 = vld [vmem:[#allocation5 + $0x1f0] sm:$0xff]  ;;  %v75_v8 = vld [vmem:[#allocation5 + $0xe8] sm:$0xff]  ;;  %s472_s1 = sshll.u32 %s697_s0, 4  ;;  %s473_s1 = int_to_ptr.vmem [resolvable:$true] %s472_s1 }
  0x1c   :  { %v61_v2 = vld [vmem:[#allocation5 + $0x78] sm:$0xff]  ;;  %517 = vmatprep.subr.mxu1 %v109_v1  ;;  %v60_v6 = vld [vmem:[#allocation5 + $0x70] sm:$0xff]  ;;  %v107_v9 = vld [vmem:[#allocation5 + $0x1e8] sm:$0xff]  ;;  %s667_s21 = scalar_lea.vmem %s473_s1, 128  ;;  %p672_p11 = scmp.lt.s32.totalorder %s473_s1, %s473_s1 }
  0x1d   :  { %v93_v3 = vld [vmem:[#allocation5 + $0x178] sm:$0xff]  ;;  %483 = vmatpush3.msra.mxu0 %v61_v2  ;;  %v92_v7 = vld [vmem:[#allocation5 + $0x170] sm:$0xff]  ;;  %v59_v10 = vld [vmem:[#allocation5 + $0x68] sm:$0xff]  ;;  %p668_p10 = scmp.ne.s32.totalorder %s473_s1, %s667_s21  ;;  %p673_p12 = scmp.lt.s32.totalorder %s667_s21, %s667_s21 }
  0x1e   :  { %518 = vmatpush3.msra.mxu1 %v93_v3  ;;  %484 = vmatprep.subr.mxu0 %v76_v4  ;;  %v91_v11 = vld [vmem:[#allocation5 + $0x168] sm:$0xff]  ;;  %v74_v12 = vld [vmem:[#allocation5 + $0xe0] sm:$0xff]  ;;  %v73_v16 = vld [vmem:[#allocation5 + $0xd8] sm:$0xff] }
  0x1f   :  { %519 = vmatprep.subr.mxu1 %v108_v5  ;;  %485 = vmatpush3.msra.mxu0 %v60_v6  ;;  %v106_v13 = vld [vmem:[#allocation5 + $0x1e0] sm:$0xff]  ;;  %v105_v17 = vld [vmem:[#allocation5 + $0x1d8] sm:$0xff]  ;;  %v72_v20 = vld [vmem:[#allocation5 + $0xd0] sm:$0xff]  ;;  %p674_p13 = por %p673_p12, %p672_p11 }
  0x20   :  { %520 = vmatpush3.msra.mxu1 %v92_v7  ;;  %486 = vmatprep.subr.mxu0 %v75_v8  ;;  %v58_v14 = vld [vmem:[#allocation5 + $0x60] sm:$0xff]  ;;  %v57_v18 = vld [vmem:[#allocation5 + $0x58] sm:$0xff]  ;;  %v104_v21 = vld [vmem:[#allocation5 + $0x1d0] sm:$0xff] }
  0x21   :  { %521 = vmatprep.subr.mxu1 %v107_v9  ;;  %v90_v15 = vld [vmem:[#allocation5 + $0x160] sm:$0xff]  ;;  %487 = vmatpush3.msra.mxu0 %v59_v10  ;;  %v89_v19 = vld [vmem:[#allocation5 + $0x158] sm:$0xff]  ;;  %v56_v22 = vld [vmem:[#allocation5 + $0x50] sm:$0xff]  ;;  %p675_p0 = pnand %p674_p13, %p668_p10 }
  0x22   :  { %522 = vmatpush3.msra.mxu1 %v91_v11  ;;  %488 = vmatprep.subr.mxu0 %v74_v12  ;;  %v88_v23 = vld [vmem:[#allocation5 + $0x150] sm:$0xff]  ;;  %v71_v24 = vld [vmem:[#allocation5 + $0xc8] sm:$0xff]  ;;  %v70_v28 = vld [vmem:[#allocation5 + $0xc0] sm:$0xff] }
  0x23   :  { %523 = vmatprep.subr.mxu1 %v106_v13  ;;  %489 = vmatpush3.msra.mxu0 %v58_v14  ;;  %v103_v25 = vld [vmem:[#allocation5 + $0x1c8] sm:$0xff]  ;;  %v102_v29 = vld [vmem:[#allocation5 + $0x1c0] sm:$0xff]  ;;  %v69_v32 = vld [vmem:[#allocation5 + $0xb8] sm:$0xff] }
  0x24   :  { %524 = vmatpush3.msra.mxu1 %v90_v15  ;;  %490 = vmatprep.subr.mxu0 %v73_v16  ;;  %v55_v26 = vld [vmem:[#allocation5 + $0x48] sm:$0xff]  ;;  %v54_v30 = vld [vmem:[#allocation5 + $0x40] sm:$0xff]  ;;  %v101_v33 = vld [vmem:[#allocation5 + $0x1b8] sm:$0xff] }
  0x25   :  { %525 = vmatprep.subr.mxu1 %v105_v17  ;;  %491 = vmatpush3.msra.mxu0 %v57_v18  ;;  %v87_v27 = vld [vmem:[#allocation5 + $0x148] sm:$0xff]  ;;  %v86_v31 = vld [vmem:[#allocation5 + $0x140] sm:$0xff]  ;;  %v53_v34 = vld [vmem:[#allocation5 + $0x38] sm:$0xff] }
  0x26   :  { %526 = vmatpush3.msra.mxu1 %v89_v19  ;;  %492 = vmatprep.subr.mxu0 %v72_v20  ;;  %v85_v35 = vld [vmem:[#allocation5 + $0x138] sm:$0xff]  ;;  %v68_v36 = vld [vmem:[#allocation5 + $0xb0] sm:$0xff]  ;;  %v67_v40 = vld [vmem:[#allocation5 + $0xa8] sm:$0xff] }
  0x27   :  { %527 = vmatprep.subr.mxu1 %v104_v21  ;;  %493 = vmatpush3.msra.mxu0 %v56_v22  ;;  %v100_v37 = vld [vmem:[#allocation5 + $0x1b0] sm:$0xff]  ;;  %v99_v41 = vld [vmem:[#allocation5 + $0x1a8] sm:$0xff]  ;;  %v66_v44 = vld [vmem:[#allocation5 + $0xa0] sm:$0xff] }
  0x28   :  { %528 = vmatpush3.msra.mxu1 %v88_v23  ;;  %494 = vmatprep.subr.mxu0 %v71_v24  ;;  %v52_v38 = vld [vmem:[#allocation5 + $0x30] sm:$0xff]  ;;  %v51_v42 = vld [vmem:[#allocation5 + $0x28] sm:$0xff]  ;;  %v98_v45 = vld [vmem:[#allocation5 + $0x1a0] sm:$0xff] }
  0x29   :  { %529 = vmatprep.subr.mxu1 %v103_v25  ;;  %495 = vmatpush3.msra.mxu0 %v55_v26  ;;  %v84_v39 = vld [vmem:[#allocation5 + $0x130] sm:$0xff]  ;;  %v83_v43 = vld [vmem:[#allocation5 + $0x128] sm:$0xff]  ;;  %v50_v46 = vld [vmem:[#allocation5 + $0x20] sm:$0xff] }
  0x2a   :  { %530 = vmatpush3.msra.mxu1 %v87_v27  ;;  %496 = vmatprep.subr.mxu0 %v70_v28  ;;  %v82_v47 = vld [vmem:[#allocation5 + $0x120] sm:$0xff]  ;;  %v65_v48 = vld [vmem:[#allocation5 + $0x98] sm:$0xff]  ;;  %v64_v52 = vld [vmem:[#allocation5 + $0x90] sm:$0xff] }
  0x2b   :  { %531 = vmatprep.subr.mxu1 %v102_v29  ;;  %497 = vmatpush3.msra.mxu0 %v54_v30  ;;  %v97_v49 = vld [vmem:[#allocation5 + $0x198] sm:$0xff]  ;;  %v96_v53 = vld [vmem:[#allocation5 + $0x190] sm:$0xff]  ;;  %v63_v56 = vld [vmem:[#allocation5 + $0x88] sm:$0xff] }
  0x2c   :  { %532 = vmatpush3.msra.mxu1 %v86_v31  ;;  %498 = vmatprep.subr.mxu0 %v69_v32  ;;  %v49_v50 = vld [vmem:[#allocation5 + $0x18] sm:$0xff]  ;;  %v48_v54 = vld [vmem:[#allocation5 + $0x10] sm:$0xff]  ;;  %v95_v57 = vld [vmem:[#allocation5 + $0x188] sm:$0xff] }
  0x2d   :  { %533 = vmatprep.subr.mxu1 %v101_v33  ;;  %499 = vmatpush3.msra.mxu0 %v53_v34  ;;  %v81_v51 = vld [vmem:[#allocation5 + $0x118] sm:$0xff]  ;;  %v80_v55 = vld [vmem:[#allocation5 + $0x110] sm:$0xff]  ;;  %v47_v58 = vld [vmem:[#allocation5 + $0x8] sm:$0xff] }
  0x2e   :  { %534 = vmatpush3.msra.mxu1 %v85_v35  ;;  %500 = vmatprep.subr.mxu0 %v68_v36  ;;  %v79_v59 = vld [vmem:[#allocation5 + $0x108] sm:$0xff]  ;;  %v62_v60 = vld [vmem:[#allocation5 + $0x80] sm:$0xff]  ;;  %v41_v1 = vld [vmem:[#allocation2 + $0x18] sm:$0xff] }
  0x2f   :  { %535 = vmatprep.subr.mxu1 %v100_v37  ;;  %501 = vmatpush3.msra.mxu0 %v52_v38  ;;  %v94_v61 = vld [vmem:[#allocation5 + $0x180] sm:$0xff]  ;;  %v39_v63 = vld [vmem:[#allocation2 + $0x8] sm:$0xff]  ;;  %v40_v3 = vld [vmem:[#allocation2 + $0x10] sm:$0xff] }
  0x30   :  { %536 = vmatpush3.msra.mxu1 %v84_v39  ;;  %502 = vmatprep.subr.mxu0 %v67_v40  ;;  %v46_v62 = vld [vmem:[#allocation5] sm:$0xff]  ;;  %v141_v4 = vld [vmem:[#allocation5 + $0x2f8] sm:$0xff]  ;;  %v140_v8 = vld [vmem:[#allocation5 + $0x2f0] sm:$0xff] }
  0x31   :  { %537 = vmatprep.subr.mxu1 %v99_v41  ;;  %503 = vmatpush3.msra.mxu0 %v51_v42  ;;  %v78_v0 = vld [vmem:[#allocation5 + $0x100] sm:$0xff]  ;;  %v173_v5 = vld [vmem:[#allocation5 + $0x3f8] sm:$0xff]  ;;  %v172_v9 = vld [vmem:[#allocation5 + $0x3f0] sm:$0xff] }
  0x32   :  { %538 = vmatpush3.msra.mxu1 %v83_v43  ;;  %504 = vmatprep.subr.mxu0 %v66_v44  ;;  %v38_v2 = vld [vmem:[#allocation2] sm:$0xff]  ;;  %v125_v6 = vld [vmem:[#allocation5 + $0x278] sm:$0xff]  ;;  %v124_v10 = vld [vmem:[#allocation5 + $0x270] sm:$0xff] }
  0x33   :  { %539 = vmatprep.subr.mxu1 %v98_v45  ;;  %505 = vmatpush3.msra.mxu0 %v50_v46  ;;  %v157_v7 = vld [vmem:[#allocation5 + $0x378] sm:$0xff]  ;;  %v156_v11 = vld [vmem:[#allocation5 + $0x370] sm:$0xff]  ;;  %v139_v12 = vld [vmem:[#allocation5 + $0x2e8] sm:$0xff] }
  0x34   :  { %540 = vmatpush3.msra.mxu1 %v82_v47  ;;  %506 = vmatprep.subr.mxu0 %v65_v48  ;;  %v171_v13 = vld [vmem:[#allocation5 + $0x3e8] sm:$0xff]  ;;  %v138_v16 = vld [vmem:[#allocation5 + $0x2e0] sm:$0xff]  ;;  %v137_v20 = vld [vmem:[#allocation5 + $0x2d8] sm:$0xff] }
  0x35   :  { %541 = vmatprep.subr.mxu1 %v97_v49  ;;  %507 = vmatpush3.msra.mxu0 %v49_v50  ;;  %v123_v14 = vld [vmem:[#allocation5 + $0x268] sm:$0xff]  ;;  %v170_v17 = vld [vmem:[#allocation5 + $0x3e0] sm:$0xff]  ;;  %v169_v21 = vld [vmem:[#allocation5 + $0x3d8] sm:$0xff] }
  0x36   :  { %542 = vmatpush3.msra.mxu1 %v81_v51  ;;  %508 = vmatprep.subr.mxu0 %v64_v52  ;;  %v155_v15 = vld [vmem:[#allocation5 + $0x368] sm:$0xff]  ;;  %v122_v18 = vld [vmem:[#allocation5 + $0x260] sm:$0xff]  ;;  %v121_v22 = vld [vmem:[#allocation5 + $0x258] sm:$0xff] }
  0x37   :  { %543 = vmatprep.subr.mxu1 %v96_v53  ;;  %509 = vmatpush3.msra.mxu0 %v48_v54  ;;  %v154_v19 = vld [vmem:[#allocation5 + $0x360] sm:$0xff]  ;;  %v153_v23 = vld [vmem:[#allocation5 + $0x358] sm:$0xff]  ;;  %v136_v24 = vld [vmem:[#allocation5 + $0x2d0] sm:$0xff] }
  0x38   :  { %544 = vmatpush3.msra.mxu1 %v80_v55  ;;  %510 = vmatprep.subr.mxu0 %v63_v56  ;;  %v168_v25 = vld [vmem:[#allocation5 + $0x3d0] sm:$0xff]  ;;  %v135_v28 = vld [vmem:[#allocation5 + $0x2c8] sm:$0xff]  ;;  %v134_v32 = vld [vmem:[#allocation5 + $0x2c0] sm:$0xff] }
  0x39   :  { %545 = vmatprep.subr.mxu1 %v95_v57  ;;  %511 = vmatpush3.msra.mxu0 %v47_v58  ;;  %v120_v26 = vld [vmem:[#allocation5 + $0x250] sm:$0xff]  ;;  %v167_v29 = vld [vmem:[#allocation5 + $0x3c8] sm:$0xff]  ;;  %v166_v33 = vld [vmem:[#allocation5 + $0x3c0] sm:$0xff] }
  0x3a   :  { %546 = vmatpush3.msra.mxu1 %v79_v59  ;;  %512 = vmatprep.subr.mxu0 %v62_v60  ;;  %v152_v27 = vld [vmem:[#allocation5 + $0x350] sm:$0xff]  ;;  %v119_v30 = vld [vmem:[#allocation5 + $0x248] sm:$0xff]  ;;  %v118_v34 = vld [vmem:[#allocation5 + $0x240] sm:$0xff] }
  0x3b   :  { %547 = vmatprep.subr.mxu1 %v94_v61  ;;  %513 = vmatpush3.msra.mxu0 %v46_v62  ;;  %v151_v31 = vld [vmem:[#allocation5 + $0x348] sm:$0xff]  ;;  %v150_v35 = vld [vmem:[#allocation5 + $0x340] sm:$0xff]  ;;  %v133_v36 = vld [vmem:[#allocation5 + $0x2b8] sm:$0xff] }
  0x3c   :  { %238 = vmatprep.mubr.f32.mxu0 %v39_v63  ;;  %548 = vmatpush3.msra.mxu1 %v78_v0  ;;  %v165_v37 = vld [vmem:[#allocation5 + $0x3b8] sm:$0xff]  ;;  %v132_v40 = vld [vmem:[#allocation5 + $0x2b0] sm:$0xff]  ;;  %v131_v44 = vld [vmem:[#allocation5 + $0x2a8] sm:$0xff] }
  0x3d   :  { %308 = vmatprep.mubr.f32.mxu1 %v41_v1  ;;  %239 = vmatmul.mubr.f32.vlgmr.msra.gmra.mxu0 %v38_v2  ;;  %v117_v38 = vld [vmem:[#allocation5 + $0x238] sm:$0xff]  ;;  %v164_v41 = vld [vmem:[#allocation5 + $0x3b0] sm:$0xff]  ;;  %v163_v45 = vld [vmem:[#allocation5 + $0x3a8] sm:$0xff] }
  0x3e   :  { %309 = vmatmul.mubr.f32.vlgmr.msra.gmra.mxu1 %v40_v3  ;;  %552 = vmatprep.subr.mxu0 %v141_v4  ;;  %v149_v39 = vld [vmem:[#allocation5 + $0x338] sm:$0xff]  ;;  %v116_v42 = vld [vmem:[#allocation5 + $0x230] sm:$0xff]  ;;  %v115_v46 = vld [vmem:[#allocation5 + $0x228] sm:$0xff] }
  0x3f   :  { %587 = vmatprep.subr.mxu1 %v173_v5  ;;  %553 = vmatpush3.msra.mxu0 %v125_v6  ;;  %v148_v43 = vld [vmem:[#allocation5 + $0x330] sm:$0xff]  ;;  %v147_v47 = vld [vmem:[#allocation5 + $0x328] sm:$0xff]  ;;  %v130_v48 = vld [vmem:[#allocation5 + $0x2a0] sm:$0xff] }
  0x40   :  { %588 = vmatpush3.msra.mxu1 %v157_v7  ;;  %554 = vmatprep.subr.mxu0 %v140_v8  ;;  %v162_v49 = vld [vmem:[#allocation5 + $0x3a0] sm:$0xff]  ;;  %v129_v52 = vld [vmem:[#allocation5 + $0x298] sm:$0xff]  ;;  %v128_v56 = vld [vmem:[#allocation5 + $0x290] sm:$0xff] }
  0x41   :  { %589 = vmatprep.subr.mxu1 %v172_v9  ;;  %555 = vmatpush3.msra.mxu0 %v124_v10  ;;  %v114_v50 = vld [vmem:[#allocation5 + $0x220] sm:$0xff]  ;;  %v161_v53 = vld [vmem:[#allocation5 + $0x398] sm:$0xff]  ;;  %v160_v57 = vld [vmem:[#allocation5 + $0x390] sm:$0xff] }
  0x42   :  { %590 = vmatpush3.msra.mxu1 %v156_v11  ;;  %556 = vmatprep.subr.mxu0 %v139_v12  ;;  %v146_v51 = vld [vmem:[#allocation5 + $0x320] sm:$0xff]  ;;  %v113_v54 = vld [vmem:[#allocation5 + $0x218] sm:$0xff]  ;;  %v112_v58 = vld [vmem:[#allocation5 + $0x210] sm:$0xff] }
  0x43   :  { %591 = vmatprep.subr.mxu1 %v171_v13  ;;  %557 = vmatpush3.msra.mxu0 %v123_v14  ;;  %v145_v55 = vld [vmem:[#allocation5 + $0x318] sm:$0xff]  ;;  %v144_v59 = vld [vmem:[#allocation5 + $0x310] sm:$0xff]  ;;  %v127_v60 = vld [vmem:[#allocation5 + $0x288] sm:$0xff] }
  0x44   :  { %592 = vmatpush3.msra.mxu1 %v155_v15  ;;  %558 = vmatprep.subr.mxu0 %v138_v16  ;;  %v159_v61 = vld [vmem:[#allocation5 + $0x388] sm:$0xff]  ;;  %v126_v0 = vld [vmem:[#allocation5 + $0x280] sm:$0xff]  ;;  %v45_v5 = vld [vmem:[#allocation2 + $0x38] sm:$0xff] }
  0x45   :  { %593 = vmatprep.subr.mxu1 %v170_v17  ;;  %559 = vmatpush3.msra.mxu0 %v122_v18  ;;  %v111_v62 = vld [vmem:[#allocation5 + $0x208] sm:$0xff]  ;;  %v158_v1 = vld [vmem:[#allocation5 + $0x380] sm:$0xff]  ;;  %v44_v7 = vld [vmem:[#allocation2 + $0x30] sm:$0xff] }
  0x46   :  { %594 = vmatpush3.msra.mxu1 %v154_v19  ;;  %560 = vmatprep.subr.mxu0 %v137_v20  ;;  %v143_v63 = vld [vmem:[#allocation5 + $0x308] sm:$0xff]  ;;  %v110_v2 = vld [vmem:[#allocation5 + $0x200] sm:$0xff] }
  0x47   :  { %595 = vmatprep.subr.mxu1 %v169_v21  ;;  %561 = vmatpush3.msra.mxu0 %v121_v22  ;;  %v43_v3 = vld [vmem:[#allocation2 + $0x28] sm:$0xff]  ;;  %v142_v4 = vld [vmem:[#allocation5 + $0x300] sm:$0xff] }
  0x48   :  { %596 = vmatpush3.msra.mxu1 %v153_v23  ;;  %562 = vmatprep.subr.mxu0 %v136_v24  ;;  %v42_v6 = vld [vmem:[#allocation2 + $0x20] sm:$0xff] }
  0x49   :  { %597 = vmatprep.subr.mxu1 %v168_v25  ;;  %563 = vmatpush3.msra.mxu0 %v120_v26 }
  0x4a   :  { %598 = vmatpush3.msra.mxu1 %v152_v27  ;;  %564 = vmatprep.subr.mxu0 %v135_v28 }
  0x4b   :  { %599 = vmatprep.subr.mxu1 %v167_v29  ;;  %565 = vmatpush3.msra.mxu0 %v119_v30 }
  0x4c   :  { %600 = vmatpush3.msra.mxu1 %v151_v31  ;;  %566 = vmatprep.subr.mxu0 %v134_v32 }
  0x4d   :  { %601 = vmatprep.subr.mxu1 %v166_v33  ;;  %567 = vmatpush3.msra.mxu0 %v118_v34 }
  0x4e   :  { %602 = vmatpush3.msra.mxu1 %v150_v35  ;;  %568 = vmatprep.subr.mxu0 %v133_v36 }
  0x4f   :  { %603 = vmatprep.subr.mxu1 %v165_v37  ;;  %569 = vmatpush3.msra.mxu0 %v117_v38 }
  0x50   :  { %604 = vmatpush3.msra.mxu1 %v149_v39  ;;  %570 = vmatprep.subr.mxu0 %v132_v40 }
  0x51   :  { %605 = vmatprep.subr.mxu1 %v164_v41  ;;  %571 = vmatpush3.msra.mxu0 %v116_v42 }
  0x52   :  { %606 = vmatpush3.msra.mxu1 %v148_v43  ;;  %572 = vmatprep.subr.mxu0 %v131_v44 }
  0x53   :  { %607 = vmatprep.subr.mxu1 %v163_v45  ;;  %573 = vmatpush3.msra.mxu0 %v115_v46 }
  0x54   :  { %608 = vmatpush3.msra.mxu1 %v147_v47  ;;  %574 = vmatprep.subr.mxu0 %v130_v48 }
  0x55   :  { %609 = vmatprep.subr.mxu1 %v162_v49  ;;  %575 = vmatpush3.msra.mxu0 %v114_v50 }
  0x56   :  { %610 = vmatpush3.msra.mxu1 %v146_v51  ;;  %576 = vmatprep.subr.mxu0 %v129_v52 }
  0x57   :  { %611 = vmatprep.subr.mxu1 %v161_v53  ;;  %577 = vmatpush3.msra.mxu0 %v113_v54 }
  0x58   :  { %612 = vmatpush3.msra.mxu1 %v145_v55  ;;  %578 = vmatprep.subr.mxu0 %v128_v56 }
  0x59   :  { %613 = vmatprep.subr.mxu1 %v160_v57  ;;  %579 = vmatpush3.msra.mxu0 %v112_v58 }
  0x5a   :  { %614 = vmatpush3.msra.mxu1 %v144_v59  ;;  %580 = vmatprep.subr.mxu0 %v127_v60 }
  0x5b   :  { %615 = vmatprep.subr.mxu1 %v159_v61  ;;  %581 = vmatpush3.msra.mxu0 %v111_v62 }
  0x5c   :  { %616 = vmatpush3.msra.mxu1 %v143_v63  ;;  %582 = vmatprep.subr.mxu0 %v126_v0 }
  0x5d   :  { %617 = vmatprep.subr.mxu1 %v158_v1  ;;  %583 = vmatpush3.msra.mxu0 %v110_v2 }
  0x5e   :  { %378 = vmatprep.mubr.f32.mxu0 %v43_v3  ;;  %618 = vmatpush3.msra.mxu1 %v142_v4 }
  0x5f   :  { %448 = vmatprep.mubr.f32.mxu1 %v45_v5  ;;  %379 = vmatmul.mubr.f32.vlgmr.msra.gmra.mxu0 %v42_v6 }
  0x60   :  { %449 = vmatmul.mubr.f32.vlgmr.msra.gmra.mxu1 %v44_v7 }
  0xfd   :  { %v514_v8 = vpop.f32.mrf.mxu0 }
  0xfe   :  { %v549_v9 = vpop.f32.mrf.mxu1 }
  0xff   :  { %v515_v10 = vpop.f32.mrf.mxu0 }
 0x100   :  { %v550_v11 = vpop.f32.mrf.mxu1  ;;  %v516_v12 = vadd.f32 %v515_v10, %v514_v8 }
 0x101   :  { %v551_v13 = vadd.f32 %v550_v11, %v549_v9 }
 0x103   :  { %v311_v18 = vadd.f32 %v551_v13, %v516_v12 }
 0x11f   :  { %v584_v14 = vpop.f32.mrf.mxu0 }
 0x120   :  { %v619_v15 = vpop.f32.mrf.mxu1 }
 0x121   :  { %v585_v16 = vpop.f32.mrf.mxu0 }
 0x122   :  { %v620_v17 = vpop.f32.mrf.mxu1  ;;  %v586_v19 = vadd.f32 %v585_v16, %v584_v14 }
 0x123   :  { %v621_v21 = vadd.f32 %v620_v17, %v619_v15 }
 0x124   :  { %v381_v20 = vadd.f32 %v586_v19, %v311_v18 }
 0x126   :  { %v451_v22 = vadd.f32 %v621_v21, %v381_v20 }
 0x128   :  { %458 = vst [vmem:[#allocation7] sm:$0xff] %v451_v22 }
 0x129   :  { %678 = shalt.err (!%p675_p0)
}
 0x12a   :  { %475 = dma.vmem_to_hbm [thread:$0]  %s473_s1, 128, %s724_s2, [#allocation4]  }
 0x12b   :  { %691 = dma.done.wait [#allocation4], 128  }
 0x12c   :  { %692 = vsyncadd [#allocation4], 4294967168 }
 0x12d   :  { %479 = vsyncpa [#allocation3], 1 }
 0x12e   :  { %480 = vsyncpa [#allocation6], 1 }
 0x12f   :  { %481 = vsyncpa [#allocation4], 1 }

</bundles_post_ra>
